<compile_context>
chip_gen: v5e
topology: v5e:2x2
jax: 0.10.0
libtpu: 0.0.40
codegen_flags: <defaults>
</compile_context>

<pallas_src>
import math
import functools

import numpy as np
import jax
import jax.numpy as jnp
from jax import lax
from jax.experimental import pallas as pl
from jax.experimental.pallas import tpu as pltpu


def _build_pe_table(dim_model: int, max_len: int) -> jnp.ndarray:
    """Replicates the buffer built in PositionalEncoding.__init__ (float32)."""
    position = jnp.arange(max_len, dtype=jnp.float32)[:, None]              # (L, 1)
    div_term = jnp.exp(
        jnp.arange(0, dim_model, 2, dtype=jnp.float32)
        * (-math.log(10000.0) / dim_model)
    )                                                                       # (D/2,)
    angles = position * div_term                                            # (L, D/2)
    # interleave sin (even feature indices) and cos (odd feature indices)
    pe = jnp.stack([jnp.sin(angles), jnp.cos(angles)], axis=-1)             # (L, D/2, 2)
    pe = pe.reshape(max_len, dim_model)                                     # (L, D)
    return pe[:, None, :]                                                   # (L, 1, D)


def _choose_seq_tile(S: int, B: int, D: int, itemsize: int) -> int:
    """Sequence-tile size targeting a ~6 MiB x block.

    Pure HBM-bound elementwise op: each grid step costs ~0.35 us of fixed
    pipeline overhead, so multi-MiB blocks are needed to sit at the HBM
    roofline (worst on v7x's ~3.2 TB/s).  6 MiB x blocks give ~25 MiB of
    double-buffered VMEM (x + out + pe), safely inside v7x's 64 MiB physical
    VMEM.  Cap only by S and the VMEM budget.
    """
    target_bytes = 6 * 1024 * 1024
    rows = max(1, target_bytes // max(1, B * D * itemsize))
    ts = min(S, rows)
    if ts >= 8:
        ts -= ts % 8          # keep sublane-aligned full blocks when possible
    return max(1, ts)


def _make_pe_kernel(p: float, training: bool, ts: int, batch: int, dim: int,
                    use_hw_prng: bool):
    keep_prob = 1.0 - p
    apply_dropout = training and p > 0.0
    # Plain Python scalars -> become literals inside the kernel trace (no
    # captured-constant error).
    threshold = min((1 << 32) - 1, int(keep_prob * float(1 << 32)))
    inv_keep = (1.0 / keep_prob) if keep_prob > 0.0 else 0.0

    def kernel(seed_ref, x_ref, pe_ref, o_ref):
        # broadcast add: (TS, B, D) + (TS, 1, D); math stays in x.dtype
        y = x_ref[...] + pe_ref[...]

        if apply_dropout:
            # TODO(synk): PyTorch's dropout RNG stream cannot be bit-reproduced;
            # we use either the TPU hardware PRNG or a deterministic
            # counter-based hash of (seed, global element index).
            shape = (ts, batch, dim)
            if use_hw_prng:
                # Hardware PRNG: essentially free, keeps the kernel HBM-bound.
                # Note: stream depends on the tile size (per-tile seeding), which
                # is fine for dropout but not tile-layout invariant.
                pltpu.prng_seed(seed_ref[0] + pl.program_id(0))
                bits = pltpu.prng_random_bits(shape)
                if bits.dtype != jnp.uint32:
                    bits = pltpu.bitcast(bits, jnp.uint32)
            else:
                # Portable lowbias32 hash of the global element index.
                # Per-(s, b) offsets are computed at (ts, B, 1) -- D x fewer
                # elements -- so the full-shape work is ~1 iota + 1 add + the
                # 8-op mix + compare + select.
                s0 = (pl.program_id(0) * ts).astype(jnp.uint32)
                seed = seed_ref[0].astype(jnp.uint32)
                s_iota = lax.broadcasted_iota(jnp.uint32, (ts, batch, 1), 0)
                b_iota = lax.broadcasted_iota(jnp.uint32, (ts, batch, 1), 1)
                row = ((s_iota + s0) * np.uint32(batch) + b_iota) * np.uint32(dim)
                row = row + seed * np.uint32(0x9E3779B9)
                d_iota = lax.broadcasted_iota(jnp.uint32, shape, 2)
                z = row + d_iota                       # global element counter
                z = (z ^ (z >> 16)) * np.uint32(0x7FEB352D)
                z = (z ^ (z >> 15)) * np.uint32(0x846CA68B)
                bits = z ^ (z >> 16)

            keep = bits < np.uint32(threshold)         # single u32 compare
            y = jnp.where(keep, y * inv_keep, 0)       # inverted dropout

        o_ref[...] = y.astype(o_ref.dtype)

    return kernel


@functools.partial(jax.jit, static_argnames=("p", "training", "use_hw_prng"))
def positional_encoding_forward(x, pe_table, seed, *, p: float = 0.1,
                                training: bool = False,
                                use_hw_prng: bool = False):
    """x: (S, B, D); pe_table: (max_len, 1, D) f32; seed: int32 array (1,)."""
    S, B, D = x.shape
    pe_slice = pe_table[:S].astype(x.dtype)            # (S, 1, D), same as pe[:x.size(0)]

    itemsize = x.dtype.itemsize
    ts = _choose_seq_tile(S, B, D, itemsize)
    grid = (pl.cdiv(S, ts),)

    kernel = _make_pe_kernel(p, training, ts, B, D, use_hw_prng)

    # Explicit scoped-VMEM budget: 2x(x block) + 2x(out block) + 2x(pe block)
    # (the aliased output still gets its own double-buffered allocation), plus
    # margin.  Floor at 32 MiB (covers v5e's 16 MiB default), cap at 64 MiB.
    x_block = ts * B * D * itemsize
    pe_block = ts * D * itemsize
    buffered = 2 * (2 * x_block + pe_block)
    vmem_limit = int(min(max(32 << 20, buffered + (2 << 20)), 64 << 20))

    grid_spec = pltpu.PrefetchScalarGridSpec(
        num_scalar_prefetch=1,                          # seed lands in SMEM
        grid=grid,
        in_specs=[
            pl.BlockSpec((ts, B, D), lambda i, seed_ref: (i, 0, 0)),   # x tile
            pl.BlockSpec((ts, 1, D), lambda i, seed_ref: (i, 0, 0)),   # pe tile (bcast in-kernel)
        ],
        out_specs=pl.BlockSpec((ts, B, D), lambda i, seed_ref: (i, 0, 0)),
    )

    cost = pl.CostEstimate(
        flops=2 * S * B * D,
        transcendentals=0,
        bytes_accessed=2 * S * B * D * itemsize + S * D * itemsize,
    )

    return pl.pallas_call(
        kernel,
        out_shape=jax.ShapeDtypeStruct((S, B, D), x.dtype),
        grid_spec=grid_spec,
        input_output_aliases={1: 0},                    # out aliases x (seed=0, x=1, pe=2)
        compiler_params=pltpu.CompilerParams(
            dimension_semantics=("parallel",),          # megacore sharding
            vmem_limit_bytes=vmem_limit,
        ),
        cost_estimate=cost,
    )(seed, x, pe_slice)


if __name__ == "__main__":
    # small shapes consistent with the module's forward: x is (seq, batch, dim_model)
    SEQ, BATCH, DIM, MAX_LEN = 8, 2, 32, 64
    P = 0.1

    key = jax.random.PRNGKey(0)
    x = jax.random.normal(key, (SEQ, BATCH, DIM), dtype=jnp.float32)
    pe_table = _build_pe_table(DIM, MAX_LEN)
    seed = jnp.array([1234], dtype=jnp.int32)

    ref = x + pe_table[:SEQ]

    # eval-mode forward (dropout is identity) -- exactly matches x + pe[:S]
    out_eval = positional_encoding_forward(x, pe_table, seed, p=P, training=False)
    out_eval = jax.block_until_ready(out_eval)
    assert out_eval.shape == (SEQ, BATCH, DIM)
    assert jnp.allclose(out_eval, ref, atol=1e-6, rtol=1e-6)

    # training-mode forward: deterministic inverted dropout (hash-PRNG, p=0.1)
    out_train = positional_encoding_forward(x, pe_table, seed, p=P, training=True)
    out_train = jax.block_until_ready(out_train)
    assert out_train.shape == (SEQ, BATCH, DIM)

    scaled = ref / (1.0 - P)
    ok = jnp.isclose(out_train, scaled, atol=1e-5, rtol=1e-5) | (out_train == 0.0)
    assert bool(jnp.all(ok)), "training output must be 0 or (x+pe)/keep_prob"
    n_dropped = int(jnp.sum(out_train == 0.0))
    assert 0 < n_dropped < SEQ * BATCH * DIM, "dropout mask degenerate"

    print("KERNEL_OK")
</pallas_src>

<mosaic_0001>
module attributes {stable_mosaic.version = 11 : i64} {
  func.func @kernel(%arg0: i32, %arg1: memref<1xi32, #tpu.memory_space<smem>>, %arg2: memref<8x2x32xf32, #tpu.memory_space<vmem>>, %arg3: memref<8x1x32xf32, #tpu.memory_space<vmem>>, %arg4: memref<8x2x32xf32, #tpu.memory_space<vmem>>) attributes {dimension_semantics = [#tpu.dimension_semantics<parallel>], iteration_bounds = array<i64: 1>, scalar_prefetch = 1 : i64, scratch_operands = 0 : i64, tpu.core_type = #tpu.core_type<tc>, window_params = [{transform_indices = @transform_0, window_bounds = array<i64: 8, 2, 32>}, {transform_indices = @transform_1, window_bounds = array<i64: 8, 1, 32>}, {transform_indices = @transform_2, window_bounds = array<i64: 8, 2, 32>}]} {
    %c0 = arith.constant 0 : index
    %c0_0 = arith.constant 0 : index
    %c0_1 = arith.constant 0 : index
    %0 = vector.load %arg2[%c0, %c0_0, %c0_1] : memref<8x2x32xf32, #tpu.memory_space<vmem>>, vector<8x2x32xf32>
    %c0_2 = arith.constant 0 : index
    %c0_3 = arith.constant 0 : index
    %c0_4 = arith.constant 0 : index
    %1 = vector.load %arg3[%c0_2, %c0_3, %c0_4] : memref<8x1x32xf32, #tpu.memory_space<vmem>>, vector<8x1x32xf32>
    %2 = vector.broadcast %1 : vector<8x1x32xf32> to vector<8x2x32xf32>
    %3 = arith.addf %0, %2 : vector<8x2x32xf32>
    %c0_5 = arith.constant 0 : index
    %c0_6 = arith.constant 0 : index
    %c0_7 = arith.constant 0 : index
    %4 = vector.load %arg4[%c0_5, %c0_6, %c0_7] : memref<8x2x32xf32, #tpu.memory_space<vmem>>, vector<8x2x32xf32>
    tpu.vector_store %arg4[%c0_5, %c0_6, %c0_7], %3 {strides = array<i32>} : memref<8x2x32xf32, #tpu.memory_space<vmem>>, vector<8x2x32xf32>,
    return
  }
  func.func @transform_0(%arg0: i32, %arg1: memref<1xi32, #tpu.memory_space<smem>>) -> (i32, i32, i32) {
    %c0_i32 = arith.constant 0 : i32
    %c0_i32_0 = arith.constant 0 : i32
    %c0_i32_1 = arith.constant 0 : i32
    return %arg0, %c0_i32, %c0_i32_0 : i32, i32, i32
  }
  func.func @transform_1(%arg0: i32, %arg1: memref<1xi32, #tpu.memory_space<smem>>) -> (i32, i32, i32) {
    %c0_i32 = arith.constant 0 : i32
    %c0_i32_0 = arith.constant 0 : i32
    %c0_i32_1 = arith.constant 0 : i32
    return %arg0, %c0_i32, %c0_i32_0 : i32, i32, i32
  }
  func.func @transform_2(%arg0: i32, %arg1: memref<1xi32, #tpu.memory_space<smem>>) -> (i32, i32, i32) {
    %c0_i32 = arith.constant 0 : i32
    %c0_i32_0 = arith.constant 0 : i32
    %c0_i32_1 = arith.constant 0 : i32
    return %arg0, %c0_i32, %c0_i32_0 : i32, i32, i32
  }
}

</mosaic_0001>

<bundles_post_ra>
// kernel: positional_encoding_forward.1
= control target key start
LH: loop header
LB: loop body
LE: loop exit
PB: predicated region body
PF: predicated region fallthrough
CT: control target
= control target key end

     0   :  { %9 = vsyncpa [#allocation5], 0  ;;  %s245_s0 = inlined_call_operand.<no memory space> [shape: s32[1], index: 0, kind: input, shape index: {}]   ;;  %s246_s1 = inlined_call_operand.hbm [shape: f32[8,2,32], index: 1, kind: input, shape index: {}, may-alias: {1,3}]   ;;  %s247_s2 = inlined_call_operand.vmem [shape: f32[8,1,32], index: 2, kind: input, shape index: {}]   ;;  %s248_s3 = inlined_call_operand.hbm [shape: f32[8,2,32], index: 3, kind: output, shape index: {}, may-alias: {1,3}]  }
   0x1   :  { %10 = vsyncpa [#allocation6], 0  ;;  %s15_s14 = sshll.u32 %s246_s1, 4  ;;  %s170_s15 = smov [#allocation4]   ;;  %s16_s14 = int_to_ptr.hbm [resolvable:$true] %s15_s14 }
   0x2   :  { %s17_s16 = sshll.u32 %s170_s15, 4  ;;  %s171_s0 = smov 32   ;;  %s18_s16 = int_to_ptr.vmem [resolvable:$true] %s17_s16 }
   0x3   :  { %s172_s17 = smov 2  }
   0x4   :  { %23 = dma.hbm_to_vmem [thread:$0]  %s16_s14, 256, %s18_s16, [#allocation5], %s171_s0, %s171_s0, %s172_s17  }
   0x5   :  { %166 = dma.done.wait [#allocation5], 256  }
   0x6   :  { %167 = vsyncadd [#allocation5], 4294967040  ;;  %vm78_vm0 = vcmask 254976   ;;  %s173_s18 = smov [#allocation7]   ;;  %s93_s1 = sshll.u32 %s248_s3, 4  ;;  %s94_s1 = int_to_ptr.hbm [resolvable:$true] %s93_s1 }
   0x7   :  { %s200_s19 = sshll.u32 %s173_s18, 4  ;;  %v30_v0 = vld [vmem:[#allocation4] sm:$0x3]  ;;  %v31_v2 = vld [vmem:[#allocation4 + $0x2] sm:$0x3]  ;;  %s92_s19 = int_to_ptr.vmem [resolvable:$true] %s200_s19 }
   0x8   :  { %v110_v1 = vld [vmem:[%s247_s2] ss:$0 sm:$0xff]  ;;  %v111_v3 = vld [vmem:[%s247_s2 + $0x1] ss:$0 sm:$0xff]  ;;  %v32_v5 = vld [vmem:[#allocation4 + $0x4] sm:$0x3] }
   0x9   :  { %v70_v4 = vadd.f32 %v110_v1, %v30_v0  ;;  %v112_v6 = vld [vmem:[%s247_s2 + $0x2] ss:$0 sm:$0xff]  ;;  %v71_v7 = vadd.f32 %v111_v3, %v31_v2  ;;  %v33_v8 = vld [vmem:[#allocation4 + $0x6] sm:$0x3]  ;;  %v113_v9 = vld [vmem:[%s247_s2 + $0x3] ss:$0 sm:$0xff] }
   0xa   :  { %v72_v10 = vadd.f32 %v112_v6, %v32_v5  ;;  %v34_v11 = vld [vmem:[#allocation4 + $0x8] sm:$0x3]  ;;  %v73_v12 = vadd.f32 %v113_v9, %v33_v8  ;;  %v114_v13 = vld [vmem:[%s247_s2 + $0x4] ss:$0 sm:$0xff]  ;;  %v35_v14 = vld [vmem:[#allocation4 + $0xa] sm:$0x3] }
   0xb   :  { %79 = vst.msk [vmem:[#allocation7] sm:$0x3] %vm78_vm0, %v70_v4  ;;  %v115_v15 = vld [vmem:[%s247_s2 + $0x5] ss:$0 sm:$0xff]  ;;  %v74_v16 = vadd.f32 %v114_v13, %v34_v11  ;;  %v36_v17 = vld [vmem:[#allocation4 + $0xc] sm:$0x3] }
   0xc   :  { %80 = vst.msk [vmem:[#allocation7 + $0x2] sm:$0x3] %vm78_vm0, %v71_v7  ;;  %v75_v18 = vadd.f32 %v115_v15, %v35_v14  ;;  %v116_v19 = vld [vmem:[%s247_s2 + $0x6] ss:$0 sm:$0xff]  ;;  %v37_v20 = vld [vmem:[#allocation4 + $0xe] sm:$0x3] }
   0xd   :  { %81 = vst.msk [vmem:[#allocation7 + $0x4] sm:$0x3] %vm78_vm0, %v72_v10  ;;  %v117_v21 = vld [vmem:[%s247_s2 + $0x7] ss:$0 sm:$0xff]  ;;  %v76_v22 = vadd.f32 %v116_v19, %v36_v17 }
   0xe   :  { %82 = vst.msk [vmem:[#allocation7 + $0x6] sm:$0x3] %vm78_vm0, %v73_v12  ;;  %v77_v23 = vadd.f32 %v117_v21, %v37_v20 }
   0xf   :  { %83 = vst.msk [vmem:[#allocation7 + $0x8] sm:$0x3] %vm78_vm0, %v74_v16 }
  0x10   :  { %84 = vst.msk [vmem:[#allocation7 + $0xa] sm:$0x3] %vm78_vm0, %v75_v18 }
  0x11   :  { %85 = vst.msk [vmem:[#allocation7 + $0xc] sm:$0x3] %vm78_vm0, %v76_v22 }
  0x12   :  { %86 = vst.msk [vmem:[#allocation7 + $0xe] sm:$0x3] %vm78_vm0, %v77_v23 }
  0x13   :  { %99 = dma.vmem_to_hbm [thread:$0]  %s92_s19, 256, %s94_s1, [#allocation6], %s171_s0, %s171_s0, %s172_s17  }
  0x14   :  { %168 = dma.done.wait [#allocation6], 256  }
  0x15   :  { %169 = vsyncadd [#allocation6], 4294967040 }
  0x16   :  { %104 = vsyncpa [#allocation5], 1 }
  0x17   :  { %105 = vsyncpa [#allocation6], 1 }

</bundles_post_ra>
